<compile_context>
chip_gen: v7x
topology: tpu7x:2x2x1
jax: 0.10.0
libtpu: 0.0.40
codegen_flags: <defaults>
</compile_context>

<pallas_src>
from math import sqrt

import jax
import jax.numpy as jnp
from jax.experimental import pallas as pl
from jax.experimental.pallas import tpu as pltpu

_NEG = -1e30  # large finite negative sentinel (never -inf: avoids inf-inf / 0*inf NaNs)


def _cdiv(a, b):
    return -(-a // b)


def _round_up(x, m):
    return _cdiv(x, m) * m


def _sdp_attention_kernel(occ_ref, bidx_ref, q_ref, feats_ref, out_ref, m_ref, acc_ref):
    # grid = (b_tiles, v_tiles); v is the reduction axis (output block fixed across it).
    tile_v, _ = feats_ref.shape
    tile_b = q_ref.shape[0]
    d_out = out_ref.shape[0]                 # feats carry one extra constant-1 column
    neg = jnp.float32(_NEG)
    b_id = pl.program_id(0)
    v_id = pl.program_id(1)

    @pl.when(v_id == 0)
    def _init():
        m_ref[...] = jnp.full_like(m_ref, neg)
        acc_ref[...] = jnp.zeros_like(acc_ref)

    # Skip (b-tile, v-tile) pairs with no segment members (scalar-prefetched occupancy).
    has_work = occ_ref[b_id * pl.num_programs(1) + v_id] != 0

    @pl.when(has_work)
    def _compute():
        feats_bf = feats_ref[...]            # [TILE_V, D+1] bf16 (last col == 1)
        q_bf = q_ref[...]                    # [TILE_B, D+1] bf16 (pre-scaled, last col == 0)
        bidx = bidx_ref[...]                 # [TILE_V, 1]   int32

        # scores S = feats @ Q^T (contract D+1 on the MXU; the padding column adds 0)
        s = jax.lax.dot_general(
            feats_bf, q_bf, (((1,), (1,)), ((), ())),
            preferred_element_type=jnp.float32)          # [TILE_V, TILE_B] f32

        # segment-membership mask: offset the [TILE_V,1] column, not the full-tile iota
        local_bid = bidx - b_id * tile_b
        col = jax.lax.broadcasted_iota(jnp.int32, (tile_v, tile_b), 1)
        one_hot = col == local_bid                        # [TILE_V, TILE_B] bool

        # online softmax over V (per segment == per column)
        masked = jnp.where(one_hot, s, neg)
        tile_max = jnp.max(masked, axis=0, keepdims=True)             # [1, TILE_B]
        m_prev = m_ref[...]
        m_new = jnp.maximum(m_prev, tile_max)
        scale = jnp.exp(m_prev - m_new)                               # [1, TILE_B]
        # exp(-1e30 - finite) flushes to 0, so non-members need no second select.
        # Columns whose running max is still _NEG pick up exp(0)=1 garbage; it is
        # annihilated by scale == 0 once a real member shows up, or zeroed in
        # _finalize for truly-empty segments.
        p = jnp.exp(masked - m_new)                                   # [TILE_V, TILE_B]
        m_ref[...] = m_new

        # acc[d, b] += sum_v feats[v, d] * p[v, b]
        # Row D (the constant-1 feature column) accumulates the softmax denominator,
        # so no extra [TILE_V, TILE_B] reduction runs on the VPU/XLU.
        # NOTE: check the bundle dump that this (0,0)-contracting dot does not insert
        # an XLU transpose of feats; if it ever does, feed a [D+1, V] pre-transposed layout.
        acc_ref[...] = acc_ref[...] * scale + jax.lax.dot_general(
            feats_bf, p.astype(jnp.bfloat16), (((0,), (0,)), ((), ())),
            preferred_element_type=jnp.float32)                       # [D+1, TILE_B]

    @pl.when(v_id == pl.num_programs(1) - 1)
    def _finalize():
        acc = acc_ref[...]
        denom = acc[d_out:d_out + 1, :]                               # [1, TILE_B]
        valid = m_ref[...] > jnp.float32(0.5 * _NEG)                  # saw >= 1 member
        inv_l = jnp.where(valid, 1.0 / denom, 0.0)                    # exact divide (epilogue)
        out_ref[...] = (acc[:d_out, :] * inv_l).astype(out_ref.dtype)


def sdp_attention(node_feats, batch_index, Q, key_dim, *, tile_v=1024, tile_b=512):
    """node_feats: [V, D], batch_index: [V] int, Q: [B, D]  ->  [V, D] (node_feats dtype)."""
    V, D = node_feats.shape
    B = Q.shape[0]

    # Balanced B tiles (multiple of 128 = MXU lane width; >=256 fills v6e/v7x MXU N dim).
    B_pad0 = _round_up(max(B, 1), 128)
    nb = max(_cdiv(B_pad0, tile_b), 1)
    TILE_B = _round_up(_cdiv(B_pad0, nb), 128)
    B_pad = TILE_B * nb

    # Balanced V tiles (multiple of 16 for bf16 sublane packing) to minimize padding.
    nv = max(_cdiv(V, tile_v), 1)
    TILE_V = _round_up(_cdiv(V, nv), 16)
    V_pad = TILE_V * nv

    inv_sqrt_kd = 1.0 / sqrt(key_dim)

    # bf16 MXU operands prepared wrapper-side:
    #   * feats get a constant-1 extra column -> row D of the accumulator is the denominator
    #   * Q is pre-scaled by 1/sqrt(key_dim) and gets a matching zero column
    #   * padded nodes carry segment id B_pad (matches no column) so they contribute nothing
    feats_aug = jnp.concatenate(
        [node_feats, jnp.ones((V, 1), node_feats.dtype)], axis=1)            # [V, D+1]
    feats_p = jnp.pad(feats_aug, ((0, V_pad - V), (0, 0))).astype(jnp.bfloat16)
    q_aug = jnp.concatenate(
        [Q * inv_sqrt_kd, jnp.zeros((B, 1), Q.dtype)], axis=1)               # [B, D+1]
    q_p = jnp.pad(q_aug, ((0, B_pad - B), (0, 0))).astype(jnp.bfloat16)
    bidx_p = jnp.pad(batch_index.astype(jnp.int32), (0, V_pad - V),
                     constant_values=B_pad).reshape(V_pad, 1)

    # Per-(b-tile, v-tile) occupancy, flattened 1-D (avoids 2-D SMEM padding blowup);
    # scalar-prefetched so the kernel can skip tiles with no segment members.
    node_ids = jnp.arange(V, dtype=jnp.int32)
    occ_idx = (batch_index.astype(jnp.int32) // TILE_B) * nv + node_ids // TILE_V
    occ = jnp.zeros((nb * nv,), jnp.int32).at[occ_idx].set(1)

    # b axis: CORE_PARALLEL only pays off with >= 2 b-tiles (v7x second TensorCore);
    # plain "parallel" vs "arbitrary" has near-zero measured codegen impact.
    b_sem = pltpu.CORE_PARALLEL if nb >= 2 else pltpu.ARBITRARY

    h_t = pl.pallas_call(
        _sdp_attention_kernel,
        out_shape=jax.ShapeDtypeStruct((D, B_pad), jnp.float32),      # H^T, lane-dense
        grid_spec=pltpu.PrefetchScalarGridSpec(
            num_scalar_prefetch=1,
            grid=(nb, nv),
            in_specs=[
                pl.BlockSpec((TILE_V, 1), lambda b, v, o: (v, 0)),       # batch_index
                pl.BlockSpec((TILE_B, D + 1), lambda b, v, o: (b, 0)),   # Q (scaled, +0 col)
                pl.BlockSpec((TILE_V, D + 1), lambda b, v, o: (v, 0)),   # node_feats (+1 col)
            ],
            out_specs=pl.BlockSpec((D, TILE_B), lambda b, v, o: (0, b)),
            scratch_shapes=[
                pltpu.VMEM((1, TILE_B), jnp.float32),        # running max per segment
                pltpu.VMEM((D + 1, TILE_B), jnp.float32),    # H^T (+ denominator row) accumulator
            ],
        ),
        compiler_params=pltpu.CompilerParams(
            dimension_semantics=(b_sem, pltpu.ARBITRARY),
            # ~13 MiB at TILE_V=1024, TILE_B=512, D=256: comfortably inside v7x's 64 MiB.
            vmem_limit_bytes=32 * 1024 * 1024,
        ),
    )(occ, bidx_p, q_p, feats_p)

    # scatter_sum with dim_size=V: rows 0..B-1 hold per-graph results, the rest are zero.
    nbv = min(B, V)
    h_seg = jnp.swapaxes(h_t[:, :nbv], 0, 1).astype(node_feats.dtype)        # [min(B,V), D]
    return jnp.zeros((V, D), node_feats.dtype).at[:nbv].set(h_seg)


def _reference(node_feats, batch_index, Q, key_dim):
    V, D = node_feats.shape
    B = Q.shape[0]
    qg = Q[batch_index]
    scores = jnp.sum(qg * node_feats, axis=-1) / jnp.float32(sqrt(key_dim))
    seg_max = jax.ops.segment_max(scores, batch_index, num_segments=B)
    e = jnp.exp(scores - seg_max[batch_index])
    seg_sum = jax.ops.segment_sum(e, batch_index, num_segments=B)
    alpha = e / seg_sum[batch_index]
    return jax.ops.segment_sum(alpha[:, None] * node_feats, batch_index, num_segments=V)


if __name__ == "__main__":
    def run_case(B, V, D, key_dim, batch_index):
        k0 = jax.random.PRNGKey(0)
        kf, kq = jax.random.split(k0)
        node_feats = jax.random.normal(kf, (V, D), dtype=jnp.float32)
        Q = jax.random.normal(kq, (B, D), dtype=jnp.float32)

        H = jax.block_until_ready(sdp_attention(node_feats, batch_index, Q, key_dim))
        assert H.shape == (V, D)

        # kernel feeds the MXU bf16: compare against the same math on bf16-rounded inputs
        ref_bf = _reference(node_feats.astype(jnp.bfloat16).astype(jnp.float32),
                            batch_index,
                            Q.astype(jnp.bfloat16).astype(jnp.float32), key_dim)
        err_bf = jnp.max(jnp.abs(H - ref_bf))
        assert jnp.allclose(H, ref_bf, atol=2e-2, rtol=2e-2), f"err vs bf16-input ref: {err_bf}"

        # sanity check against the full-f32 reference (bf16 MXU operands -> loose tol)
        ref32 = _reference(node_feats, batch_index, Q, key_dim)
        err32 = jnp.max(jnp.abs(H - ref32))
        assert jnp.allclose(H, ref32, atol=1e-1, rtol=1e-1), f"err vs f32 ref: {err32}"

    # case 1: B=2 graphs, V=16 nodes (9 + 7), randomly interleaved (unsorted batch_index)
    bidx1 = jax.random.permutation(
        jax.random.PRNGKey(1),
        jnp.concatenate([jnp.zeros((9,), jnp.int32), jnp.ones((7,), jnp.int32)]))
    run_case(2, 16, 32, 32, bidx1)

    # case 2: an empty segment (B=3 but no node belongs to graph 2) — no NaNs allowed
    bidx2 = jnp.concatenate([jnp.zeros((5,), jnp.int32), jnp.ones((11,), jnp.int32)])
    run_case(3, 16, 32, 32, bidx2)

    print("KERNEL_OK")
</pallas_src>

<mosaic_0001>
module attributes {stable_mosaic.version = 11 : i64} {
  func.func @_sdp_attention_kernel(%arg0: i32, %arg1: i32, %arg2: memref<1xi32, #tpu.memory_space<smem>>, %arg3: memref<16x1xi32, #tpu.memory_space<vmem>>, %arg4: memref<128x33xbf16, #tpu.memory_space<vmem>>, %arg5: memref<16x33xbf16, #tpu.memory_space<vmem>>, %arg6: memref<32x128xf32, #tpu.memory_space<vmem>>, %arg7: memref<1x128xf32, #tpu.memory_space<vmem>>, %arg8: memref<33x128xf32, #tpu.memory_space<vmem>>) attributes {dimension_semantics = [#tpu.dimension_semantics<arbitrary>, #tpu.dimension_semantics<arbitrary>], iteration_bounds = array<i64: 1, 1>, scalar_prefetch = 1 : i64, scratch_operands = 2 : i64, tpu.core_type = #tpu.core_type<tc>, window_params = [{transform_indices = @transform_0, window_bounds = array<i64: 16, 1>}, {transform_indices = @transform_1, window_bounds = array<i64: 128, 33>}, {transform_indices = @transform_2, window_bounds = array<i64: 16, 33>}, {transform_indices = @transform_3, window_bounds = array<i64: 32, 128>}]} {
    %c0_i32 = arith.constant 0 : i32
    %0 = arith.cmpi eq, %arg1, %c0_i32 : i32
    %1 = arith.extui %0 : i1 to i32
    %cst = arith.constant -1.000000e+30 : f32
    %c0_i32_0 = arith.constant 0 : i32
    %2 = arith.cmpi ne, %1, %c0_i32_0 : i32
    scf.if %2 {
      %13 = vector.broadcast %cst : f32 to vector<1x128xf32>
      %c0 = arith.constant 0 : index
      %c0_6 = arith.constant 0 : index
      %14 = vector.load %arg7[%c0, %c0_6] : memref<1x128xf32, #tpu.memory_space<vmem>>, vector<1x128xf32>
      tpu.vector_store %arg7[%c0, %c0_6], %13 {strides = array<i32>} : memref<1x128xf32, #tpu.memory_space<vmem>>, vector<1x128xf32>,
      %cst_7 = arith.constant 0.000000e+00 : f32
      %15 = vector.broadcast %cst_7 : f32 to vector<33x128xf32>
      %c0_8 = arith.constant 0 : index
      %c0_9 = arith.constant 0 : index
      %16 = vector.load %arg8[%c0_8, %c0_9] : memref<33x128xf32, #tpu.memory_space<vmem>>, vector<33x128xf32>
      tpu.vector_store %arg8[%c0_8, %c0_9], %15 {strides = array<i32>} : memref<33x128xf32, #tpu.memory_space<vmem>>, vector<33x128xf32>,
    } else {
    }
    %c1_i32 = arith.constant 1 : i32
    %3 = arith.muli %arg0, %c1_i32 : i32
    %4 = arith.addi %3, %arg1 : i32
    %5 = arith.index_cast %4 : i32 to index
    %6 = memref.load %arg2[%5] : memref<1xi32, #tpu.memory_space<smem>>
    %c0_i32_1 = arith.constant 0 : i32
    %7 = arith.cmpi ne, %6, %c0_i32_1 : i32
    %8 = arith.extui %7 : i1 to i32
    %cst_2 = arith.constant -1.000000e+30 : f32
    %c0_i32_3 = arith.constant 0 : i32
    %9 = arith.cmpi ne, %8, %c0_i32_3 : i32
    scf.if %9 {
      %c0 = arith.constant 0 : index
      %c0_6 = arith.constant 0 : index
      %13 = vector.load %arg5[%c0, %c0_6] : memref<16x33xbf16, #tpu.memory_space<vmem>>, vector<16x33xbf16>
      %c0_7 = arith.constant 0 : index
      %c0_8 = arith.constant 0 : index
      %14 = vector.load %arg4[%c0_7, %c0_8] : memref<128x33xbf16, #tpu.memory_space<vmem>>, vector<128x33xbf16>
      %c0_9 = arith.constant 0 : index
      %c0_10 = arith.constant 0 : index
      %15 = vector.load %arg3[%c0_9, %c0_10] : memref<16x1xi32, #tpu.memory_space<vmem>>, vector<16x1xi32>
      %cst_11 = arith.constant dense<0.000000e+00> : vector<16x128xf32>
      %16 = tpu.matmul %13, %14, %cst_11 {dimension_numbers = #tpu.dot_dimension_numbers<[1], [1], [0], [0], [0, 0, 1, 0], [], []>} : vector<16x33xbf16>, vector<128x33xbf16>, vector<16x128xf32> -> vector<16x128xf32>
      %c128_i32 = arith.constant 128 : i32
      %17 = arith.muli %arg0, %c128_i32 : i32
      %18 = vector.broadcast %17 : i32 to vector<16x1xi32>
      %19 = arith.subi %15, %18 : vector<16x1xi32>
      %20 = tpu.iota {dimensions = array<i32: 1>} : vector<16x128xi32>
      %21 = vector.broadcast %19 : vector<16x1xi32> to vector<16x128xi32>
      %22 = arith.cmpi eq, %20, %21 : vector<16x128xi32>
      %23 = vector.broadcast %cst_2 : f32 to vector<16x128xf32>
      %24 = arith.select %22, %16, %23 : vector<16x128xi1>, vector<16x128xf32>
      %cst_12 = arith.constant dense<0xFF800000> : vector<128xf32>
      %25 = vector.multi_reduction <maximumf>, %24, %cst_12 [0] : vector<16x128xf32> to vector<128xf32>
      %26 = vector.shape_cast %25 : vector<128xf32> to vector<1x128xf32>
      %c0_13 = arith.constant 0 : index
      %c0_14 = arith.constant 0 : index
      %27 = vector.load %arg7[%c0_13, %c0_14] : memref<1x128xf32, #tpu.memory_space<vmem>>, vector<1x128xf32>
      %28 = arith.maximumf %27, %26 : vector<1x128xf32>
      %29 = arith.subf %27, %28 : vector<1x128xf32>
      %30 = math.exp %29 : vector<1x128xf32>
      %31 = vector.broadcast %28 : vector<1x128xf32> to vector<16x128xf32>
      %32 = arith.subf %24, %31 : vector<16x128xf32>
      %33 = math.exp %32 : vector<16x128xf32>
      %c0_15 = arith.constant 0 : index
      %c0_16 = arith.constant 0 : index
      %34 = vector.load %arg7[%c0_15, %c0_16] : memref<1x128xf32, #tpu.memory_space<vmem>>, vector<1x128xf32>
      tpu.vector_store %arg7[%c0_15, %c0_16], %28 {strides = array<i32>} : memref<1x128xf32, #tpu.memory_space<vmem>>, vector<1x128xf32>,
      %c0_17 = arith.constant 0 : index
      %c0_18 = arith.constant 0 : index
      %35 = vector.load %arg8[%c0_17, %c0_18] : memref<33x128xf32, #tpu.memory_space<vmem>>, vector<33x128xf32>
      %36 = vector.broadcast %30 : vector<1x128xf32> to vector<33x128xf32>
      %37 = arith.mulf %35, %36 : vector<33x128xf32>
      %38 = arith.truncf %33 : vector<16x128xf32> to vector<16x128xbf16>
      %cst_19 = arith.constant dense<0.000000e+00> : vector<33x128xf32>
      %39 = tpu.matmul %13, %38, %cst_19 {dimension_numbers = #tpu.dot_dimension_numbers<[0], [0], [1], [1], [0, 1, 1, 1], [], []>} : vector<16x33xbf16>, vector<16x128xbf16>, vector<33x128xf32> -> vector<33x128xf32>
      %40 = arith.addf %37, %39 : vector<33x128xf32>
      %c0_20 = arith.constant 0 : index
      %c0_21 = arith.constant 0 : index
      %41 = vector.load %arg8[%c0_20, %c0_21] : memref<33x128xf32, #tpu.memory_space<vmem>>, vector<33x128xf32>
      tpu.vector_store %arg8[%c0_20, %c0_21], %40 {strides = array<i32>} : memref<33x128xf32, #tpu.memory_space<vmem>>, vector<33x128xf32>,
    } else {
    }
    %c0_i32_4 = arith.constant 0 : i32
    %10 = arith.cmpi eq, %arg1, %c0_i32_4 : i32
    %11 = arith.extui %10 : i1 to i32
    %c0_i32_5 = arith.constant 0 : i32
    %12 = arith.cmpi ne, %11, %c0_i32_5 : i32
    scf.if %12 {
      %c0 = arith.constant 0 : index
      %c0_6 = arith.constant 0 : index
      %13 = vector.load %arg8[%c0, %c0_6] : memref<33x128xf32, #tpu.memory_space<vmem>>, vector<33x128xf32>
      %14 = vector.extract_strided_slice %13 {offsets = [32, 0], sizes = [1, 128], strides = [1, 1]} : vector<33x128xf32> to vector<1x128xf32>
      %c0_7 = arith.constant 0 : index
      %c0_8 = arith.constant 0 : index
      %15 = vector.load %arg7[%c0_7, %c0_8] : memref<1x128xf32, #tpu.memory_space<vmem>>, vector<1x128xf32>
      %cst_9 = arith.constant -5.000000e+29 : f32
      %16 = vector.broadcast %cst_9 : f32 to vector<1x128xf32>
      %17 = arith.cmpf ogt, %15, %16 : vector<1x128xf32>
      %cst_10 = arith.constant 1.000000e+00 : f32
      %18 = vector.broadcast %cst_10 : f32 to vector<1x128xf32>
      %19 = arith.divf %18, %14 : vector<1x128xf32>
      %cst_11 = arith.constant 0.000000e+00 : f32
      %20 = vector.broadcast %cst_11 : f32 to vector<1x128xf32>
      %21 = arith.select %17, %19, %20 : vector<1x128xi1>, vector<1x128xf32>
      %22 = vector.extract_strided_slice %13 {offsets = [0, 0], sizes = [32, 128], strides = [1, 1]} : vector<33x128xf32> to vector<32x128xf32>
      %23 = vector.broadcast %21 : vector<1x128xf32> to vector<32x128xf32>
      %24 = arith.mulf %22, %23 : vector<32x128xf32>
      %c0_12 = arith.constant 0 : index
      %c0_13 = arith.constant 0 : index
      %25 = vector.load %arg6[%c0_12, %c0_13] : memref<32x128xf32, #tpu.memory_space<vmem>>, vector<32x128xf32>
      tpu.vector_store %arg6[%c0_12, %c0_13], %24 {strides = array<i32>} : memref<32x128xf32, #tpu.memory_space<vmem>>, vector<32x128xf32>,
    } else {
    }
    return
  }
  func.func @transform_0(%arg0: i32, %arg1: i32, %arg2: memref<1xi32, #tpu.memory_space<smem>>) -> (i32, i32) {
    %c0_i32 = arith.constant 0 : i32
    %c0_i32_0 = arith.constant 0 : i32
    return %arg1, %c0_i32 : i32, i32
  }
  func.func @transform_1(%arg0: i32, %arg1: i32, %arg2: memref<1xi32, #tpu.memory_space<smem>>) -> (i32, i32) {
    %c0_i32 = arith.constant 0 : i32
    %c0_i32_0 = arith.constant 0 : i32
    return %arg0, %c0_i32 : i32, i32
  }
  func.func @transform_2(%arg0: i32, %arg1: i32, %arg2: memref<1xi32, #tpu.memory_space<smem>>) -> (i32, i32) {
    %c0_i32 = arith.constant 0 : i32
    %c0_i32_0 = arith.constant 0 : i32
    return %arg1, %c0_i32 : i32, i32
  }
  func.func @transform_3(%arg0: i32, %arg1: i32, %arg2: memref<1xi32, #tpu.memory_space<smem>>) -> (i32, i32) {
    %c0_i32 = arith.constant 0 : i32
    %c0_i32_0 = arith.constant 0 : i32
    return %c0_i32, %arg0 : i32, i32
  }
}

</mosaic_0001>

<bundles_post_ra>
// kernel: tpu_custom_call.1
= control target key start
LH: loop header
LB: loop body
LE: loop exit
PB: predicated region body
PF: predicated region fallthrough
CT: control target
= control target key end

     0   :  { %10 = vsyncpa [#allocation7], 0  ;;  %v473_v0 = vmov -1e+30   ;;  %v474_v1 = vmov 0.0   ;;  %s580_s0 = inlined_call_operand.<no memory space> [shape: s32[1], index: 0, kind: input, shape index: {}]   ;;  %s581_s1 = inlined_call_operand.vmem [shape: s32[16,1], index: 1, kind: input, shape index: {}]   ;;  %s582_s2 = inlined_call_operand.vmem [shape: bf16[128,33], index: 2, kind: input, shape index: {}]   ;;  %s583_s3 = inlined_call_operand.vmem [shape: bf16[16,33], index: 3, kind: input, shape index: {}]   ;;  %s584_s4 = inlined_call_operand.hbm [shape: f32[32,128], index: 4, kind: output, shape index: {}]  }
   0x1   :  { %22 = vst [vmem:[#allocation2] sm:$0x1] %v473_v0  ;;  %23 = vst [vmem:[#allocation3] sm:$0xff] %v474_v1  ;;  %p362_p0 = scmp.eq.s32.totalorder %s580_s0, 0 }
   0x2   :  { %24 = vst [vmem:[#allocation3 + $0x8] sm:$0xff] %v474_v1  ;;  %25 = vst [vmem:[#allocation3 + $0x10] sm:$0xff] %v474_v1  ;;  %v432_v2 = vld [vmem:[%s582_s2] sm:$0xff] (!%p362_p0)   ;;  %v475_v3 = vmov (!%p362_p0), 0.0   ;;  %vm99_vm0 = vcmask (!%p362_p0), 269312   ;;  %v433_v5 = vld [vmem:[%s582_s2 + $0x8] sm:$0xff] (!%p362_p0)   ;;  %v172_v24 = vlaneseq (!%p362_p0) }
   0x3   :  { %26 = vst [vmem:[#allocation3 + $0x18] sm:$0xff] %v474_v1  ;;  %27 = vst [vmem:[#allocation3 + $0x20] sm:$0x1] %v474_v1  ;;  %33 = sbr.rel (%p362_p0) target bundleno = 552 (0x228), region = 21  ;;  %389 = vmatprep.subr.bf16.mxu0 (!%p362_p0), %v475_v3  ;;  %409 = vmatprep.subr.bf16.mxu1 (!%p362_p0), %v475_v3  ;;  %v104_v4 = vsel (!%p362_p0), %vm99_vm0, %v432_v2, 0  ;;  %v107_v6 = vsel (!%p362_p0), %vm99_vm0, %v433_v5, 0 }
   0x4   :  { %390 = vmatpush3.bf16.xpose.msra.mxu0 (!%p362_p0), %v104_v4  ;;  %vm476_vm1 = vmmov (!%p362_p0), 0   ;;  %v52_v7 = vld [vmem:[%s581_s1] sm:$0xff] (!%p362_p0)  ;;  %v477_v9 = vmov (!%p362_p0), 0   ;;  %v434_v10 = vld [vmem:[%s582_s2 + $0x10] sm:$0xff] (!%p362_p0)   ;;  %v53_v11 = vld [vmem:[%s581_s1 + $0x8] sm:$0xff] (!%p362_p0)  ;;  %v173_v25 = vand.u32 (!%p362_p0), 127, %v172_v24 }
   0x5   :  { %391 = vmatprep.subr.bf16.mxu0 (!%p362_p0), %v475_v3  ;;  %405 = vmatprep.mubr.msk.bf16.mxu0 (!%p362_p0), %vm476_vm1, %v475_v3  ;;  %v440_v8 = vld [vmem:[%s583_s3] sm:$0xff] (!%p362_p0)   ;;  %v110_v12 = vsel (!%p362_p0), %vm99_vm0, %v434_v10, 0  ;;  %v435_v13 = vld [vmem:[%s582_s2 + $0x18] sm:$0xff] (!%p362_p0)   ;;  %v437_v17 = vld [vmem:[%s582_s2 + $0x28] sm:$0xff] (!%p362_p0)   ;;  %v198_v38 = vshrl.u32 (!%p362_p0), %v172_v24, 7  ;;  %vm243_vm4 = vcmask (!%p362_p0), 130048  }
   0x6   :  { %411 = vmatprep.mubr.msk.bf16.mxu1 (!%p362_p0), %vm476_vm1, %v475_v3  ;;  %431 = vset.pattern.permute.xlu0 (!%p362_p0), %v477_v9  ;;  %v113_v14 = vsel (!%p362_p0), %vm99_vm0, %v435_v13, 0  ;;  %v436_v15 = vld [vmem:[%s582_s2 + $0x20] sm:$0xff] (!%p362_p0)   ;;  %v119_v18 = vsel (!%p362_p0), %vm99_vm0, %v437_v17, 0  ;;  %v438_v19 = vld [vmem:[%s582_s2 + $0x30] sm:$0xff] (!%p362_p0)   ;;  %v439_v21 = vld [vmem:[%s582_s2 + $0x38] sm:$0xff] (!%p362_p0)  }
   0x7   :  { %175 = vperm.xlu0 (!%p362_p0), %431, %v52_v7   ;;  %227 = vxpose.xlu1.c.b16.start.end [1/1] (short) (narrow) (!%p362_p0), %v440_v8, 48  ;;  %v116_v16 = vsel (!%p362_p0), %vm99_vm0, %v436_v15, 0  ;;  %v122_v20 = vsel (!%p362_p0), %vm99_vm0, %v438_v19, 0  ;;  %v125_v22 = vsel (!%p362_p0), %vm99_vm0, %v439_v21, 0  ;;  %v199_v42 = vsub.s32 (!%p362_p0), 0, %v198_v38 }
   0x8   :  { %v191_v40 = vld [vmem:[#allocation2] sm:$0x1] (!%p362_p0)  ;;  %v209_v59 = vld [vmem:[#allocation3] sm:$0xff] (!%p362_p0) }
   0x9   :  { %v210_v60 = vld [vmem:[#allocation3 + $0x8] sm:$0xff] (!%p362_p0) }
   0xa   :  { %v212_v7 = vld [vmem:[#allocation3 + $0x18] sm:$0xff]  ;;  %v213_v15 = vld [vmem:[#allocation3 + $0x20] sm:$0x1] }
   0xb   :  { %178 = vperm.xlu0 %431, %v53_v11  }
   0xc   :  { %392 = vmatpush3.bf16.xpose.msra.mxu0 %v107_v6  ;;  %v211_v6 = vld [vmem:[#allocation3 + $0x10] sm:$0xff] }
   0xd   :  { %393 = vmatprep.subr.bf16.mxu0 %v475_v3 }
  0x14   :  { %394 = vmatpush3.bf16.xpose.msra.mxu0 %v110_v12 }
  0x15   :  { %395 = vmatprep.subr.bf16.mxu0 %v475_v3 }
  0x1c   :  { %396 = vmatpush3.bf16.xpose.msra.mxu0 %v113_v14 }
  0x1d   :  { %397 = vmatprep.subr.bf16.mxu0 %v475_v3 }
  0x24   :  { %398 = vmatpush3.bf16.xpose.msra.mxu0 %v116_v16 }
  0x25   :  { %399 = vmatprep.subr.bf16.mxu0 %v475_v3 }
  0x2c   :  { %400 = vmatpush3.bf16.xpose.msra.mxu0 %v119_v18 }
  0x2d   :  { %401 = vmatprep.subr.bf16.mxu0 %v475_v3 }
  0x34   :  { %402 = vmatpush3.bf16.xpose.msra.mxu0 %v122_v20 }
  0x35   :  { %403 = vmatprep.subr.bf16.mxu0 %v475_v3 }
  0x3c   :  { %404 = vmatpush3.bf16.xpose.msra.mxu0 %v125_v22 }
  0x43   :  { %406 = vmatmul.mubr.msk.bf16.vlgmr.msra.gmra.mrb[0].mxu0 %vm99_vm0, %v440_v8 }
  0x6d   :  { %v235_v56 = vpop.trf.xlu1 }
  0x71   :  { %v236_v57 = vpop.trf.xlu1 }
  0x75   :  { %v237_v58 = vpop.trf.xlu1 }
  0x86   :  { %v176_v23 = vpop.permute.xlu0 %175 }
  0x87   :  { %vm180_vm2 = vcmp.eq.s32.totalorder %v173_v25, %v176_v23 }
  0x8a   :  { %v179_v26 = vpop.permute.xlu0 %178 }
  0x8b   :  { %vm181_vm3 = vcmp.eq.s32.totalorder %v173_v25, %v179_v26 }
 0x116   :  { %v161_v27 = vpop.f32.mrb[0].mxu0 }
 0x117   :  { %v407_v28 = vpop.f32.mrb[1].mxu0  ;;  %v182_v30 = vsel %vm180_vm2, %v161_v27, -1e+30 }
 0x118   :  { %v164_v29 = vpop.f32.mrb[2].mxu0 }
 0x119   :  { %v183_v31 = vsel %vm181_vm3, %v164_v29, -1e+30  ;;  %v408_v32 = vpop.f32.mrb[3].mxu0 }
 0x11a   :  { %v184_v33 = vmax.f32 %v182_v30, %v183_v31 }
 0x11c   :  { %v185_v34 = vrot.slane %v184_v33, 4 }
 0x11e   :  { %v186_v35 = vmax.f32 %v184_v33, %v185_v34 }
 0x120   :  { %v187_v36 = vrot.slane %v186_v35, 2 }
 0x122   :  { %v188_v37 = vmax.f32 %v186_v35, %v187_v36 }
 0x124   :  { %v189_v39 = vrot.slane %v188_v37, 1 }
 0x126   :  { %v190_v41 = vmax.f32 %v188_v37, %v189_v39 }
 0x128   :  { %v192_v43 = vmax.f32 %v191_v40, %v190_v41 }
 0x12a   :  { %v193_v44 = vsub.f32 %v191_v40, %v192_v43  ;;  %v200_v45 = vrot.slane %v192_v43, %v199_v42  ;;  %208 = vst [vmem:[#allocation2] sm:$0x1] %v192_v43 }
 0x12c   :  { %v194_v46 = vmul.f32 1.442695, %v193_v44  ;;  %v202_v47 = vsub.f32 %v182_v30, %v200_v45  ;;  %v203_v48 = vsub.f32 %v183_v31, %v200_v45 }
 0x12e   :  { %441 = vpow2.f32 %v194_v46  ;;  %v204_v49 = vmul.f32 1.442695, %v202_v47  ;;  %v206_v50 = vmul.f32 1.442695, %v203_v48 }
 0x130   :  { %443 = vpow2.f32 %v204_v49 }
 0x131   :  { %445 = vpow2.f32 %v206_v50 }
 0x138   :  { %v442_v51 = vpop.eup %441 }
 0x139   :  { %v218_v52 = vrot.slane %v442_v51, %v199_v42 }
 0x13a   :  { %v444_v53 = vpop.eup %443 }
 0x13b   :  { %v446_v54 = vpop.eup %445  ;;  %v220_v61 = vmul.f32 %v218_v52, %v209_v59  ;;  %v221_v1 = vmul.f32 %v218_v52, %v210_v60  ;;  %v222_v8 = vmul.f32 %v218_v52, %v211_v6  ;;  %v223_v11 = vmul.f32 %v218_v52, %v212_v7 }
 0x13c   :  { %v225_v55 = vpack.c.bf16 %v446_v54, %v444_v53  ;;  %v224_v16 = vmul.f32 %v218_v52, %v213_v15 }
 0x13e   :  { %410 = vmatpush3.bf16.msra.mxu1 %v225_v55 }
 0x141   :  { %412 = vmatmul.mubr.msk.bf16.vlgmr.msra.gmra.mrb[0].mxu1 %vm243_vm4, %v235_v56 }
 0x142   :  { %415 = vmatprep.mubr.msk.bf16.mxu1 %vm476_vm1, %v475_v3 }
 0x149   :  { %416 = vmatmul.mubr.msk.bf16.gmra.mrb[4].mxu1 %vm243_vm4, %v236_v57 }
 0x14a   :  { %419 = vmatprep.mubr.msk.bf16.mxu1 %vm476_vm1, %v475_v3 }
 0x151   :  { %420 = vmatmul.mubr.msk.bf16.gmra.mrb[8].mxu1 %vm243_vm4, %v237_v58 }
 0x214   :  { %v287_v62 = vpop.f32.mrb[0].mxu1 }
 0x215   :  { %v309_v63 = vadd.f32 %v287_v62, %v220_v61  ;;  %v413_v0 = vpop.f32.mrb[1].mxu1 }
 0x216   :  { %v290_v2 = vpop.f32.mrb[2].mxu1 }
 0x217   :  { %314 = vst [vmem:[#allocation3] sm:$0xff] %v309_v63  ;;  %v310_v4 = vadd.f32 %v290_v2, %v221_v1  ;;  %v414_v5 = vpop.f32.mrb[3].mxu1 }
 0x219   :  { %315 = vst [vmem:[#allocation3 + $0x8] sm:$0xff] %v310_v4 }
 0x21c   :  { %v295_v9 = vpop.f32.mrb[4].mxu1 }
 0x21d   :  { %v311_v10 = vadd.f32 %v295_v9, %v222_v8  ;;  %v417_v3 = vpop.f32.mrb[5].mxu1 }
 0x21e   :  { %v298_v12 = vpop.f32.mrb[6].mxu1 }
 0x21f   :  { %316 = vst [vmem:[#allocation3 + $0x10] sm:$0xff] %v311_v10  ;;  %v312_v13 = vadd.f32 %v298_v12, %v223_v11  ;;  %v418_v14 = vpop.f32.mrb[7].mxu1 }
 0x221   :  { %317 = vst [vmem:[#allocation3 + $0x18] sm:$0xff] %v312_v13 }
 0x224   :  { %v303_v17 = vpop.f32.mrb[8].mxu1 }
 0x225   :  { %v313_v18 = vadd.f32 %v303_v17, %v224_v16  ;;  %v421_v19 = vpop.f32.mrb[9].mxu1 }
 0x226   :  { %v306_v20 = vpop.f32.mrb[10].mxu1 }
 0x227   :  { %318 = vst [vmem:[#allocation3 + $0x20] sm:$0x1] %v313_v18  ;;  %v422_v21 = vpop.f32.mrb[11].mxu1 }
 0x228 PF:  { %v333_v23 = vlaneseq  ;;  %v327_v25 = vld [vmem:[#allocation2] sm:$0x1]  ;;  %v322_v28 = vld [vmem:[#allocation3] sm:$0xff]  ;;  %s478_s2 = smov [#allocation6]   ;;  %v323_v30 = vld [vmem:[#allocation3 + $0x8] sm:$0xff] }
 0x229   :  { %vm328_vm5 = vcmp.gt.f32.partialorder %v327_v25, -5e+29  ;;  %s351_s10 = sshll.u32 %s478_s2, 4  ;;  %v324_v31 = vld [vmem:[#allocation3 + $0x10] sm:$0xff]  ;;  %v325_v32 = vld [vmem:[#allocation3 + $0x18] sm:$0xff]  ;;  %s352_s10 = int_to_ptr.vmem [resolvable:$true] %s351_s10 }
 0x22a   :  { %v334_v24 = vshrl.u32 %v333_v23, 7  ;;  %s449_s11 = scalar_lea.vmem %s352_s10, 512  ;;  %p454_p2 = scmp.lt.s32.totalorder %s352_s10, %s352_s10 }
 0x22b   :  { %p450_p1 = scmp.ne.s32.totalorder %s352_s10, %s449_s11  ;;  %p455_p3 = scmp.lt.s32.totalorder %s449_s11, %s449_s11 }
 0x22c   :  { %v335_v26 = vsub.s32 0, %v334_v24 }
 0x22d   :  { %p456_p4 = por %p455_p3, %p454_p2 }
 0x22e   :  { %v326_v22 = vld [vmem:[#allocation3 + $0x20] sm:$0x1] }
 0x22f   :  { %447 = vrcp.f32 %v326_v22  ;;  %p457_p5 = pnand %p456_p4, %p450_p1 }
 0x239   :  { %v448_v27 = vpop.eup %447 }
 0x23a   :  { %v331_v29 = vsel %vm328_vm5, %v448_v27, 0.0 }
 0x23b   :  { %v336_v33 = vrot.slane %v331_v29, %v335_v26 }
 0x23d   :  { %v338_v34 = vmul.f32 %v336_v33, %v322_v28  ;;  %v339_v35 = vmul.f32 %v336_v33, %v323_v30  ;;  %v340_v36 = vmul.f32 %v336_v33, %v324_v31  ;;  %v341_v37 = vmul.f32 %v336_v33, %v325_v32 }
 0x23f   :  { %342 = vst [vmem:[#allocation6] sm:$0xff] %v338_v34  ;;  %343 = vst [vmem:[#allocation6 + $0x8] sm:$0xff] %v339_v35 }
 0x240   :  { %344 = vst [vmem:[#allocation6 + $0x10] sm:$0xff] %v340_v36  ;;  %345 = vst [vmem:[#allocation6 + $0x18] sm:$0xff] %v341_v37 }
 0x241   :  { %460 = shalt.err (!%p457_p5)
}
 0x242   :  { %s461_s14 = scalar_lea.hbm %s584_s4, 512 }
 0x243   :  { %p462_p6 = scmp.ne.s32.totalorder %s584_s4, %s461_s14  ;;  %p465_p7 = scmp.lt.u32.totalorder %s461_s14, %s584_s4 }
 0x245   :  { %p467_p8 = pnand %p465_p7, %p462_p6 }
 0x247   :  { %470 = shalt.err (!%p467_p8)
}
 0x248   :  { %s479_s19 = smov 128   ;;  %s480_s20 = smov 8  }
 0x249   :  { %357 = dma.vmem_to_hbm [thread:$0]  %s352_s10, 512, %s584_s4, [#allocation7], %s479_s19, %s479_s19, %s480_s20  }
 0x24a   :  { %471 = dma.done.wait [#allocation7], 512  }
 0x24b   :  { %472 = vsyncadd [#allocation7], 4294966784 }
 0x24c   :  { %361 = vsyncpa [#allocation7], 1 }

</bundles_post_ra>
